<compile_context>
chip_gen: v5e
topology: v5e:2x2
jax: 0.10.0
libtpu: 0.0.40
codegen_flags: <defaults>
</compile_context>

<pallas_src>
import functools

import jax
import jax.numpy as jnp
from jax.experimental import pallas as pl
from jax.experimental.pallas import tpu as pltpu


@functools.lru_cache(maxsize=None)
def _build_gather_slice(axis, x1_shape, dtype_name):
    """Builds a jitted callable(x1, offset_vec) -> size-1 slice along `axis`."""
    dtype = jnp.dtype(dtype_name)
    ndim = len(x1_shape)
    ax = axis if axis in (0, 1) else ndim - 1
    dim = x1_shape[ax]
    reshape_to = None

    if ax <= ndim - 3:
        # ---- sliced axis is a leading ("batch") dim: offset-driven block DMA.
        block_in = list(x1_shape)
        block_in[ax] = 1
        out_shape = tuple(block_in)

        def idx_in(i, off):
            idx = [0] * ndim
            idx[ax] = off[0]          # block size 1 -> block index == element
            return tuple(idx)

        def kernel(off_ref, x_ref, o_ref):
            o_ref[...] = x_ref[...]

        in_spec = pl.BlockSpec(tuple(block_in), idx_in)
        out_spec = pl.BlockSpec(out_shape, lambda i, off: (0,) * ndim)
        pallas_out = jax.ShapeDtypeStruct(out_shape, dtype)

    elif ax == ndim - 2:
        # ---- sliced axis is the sublane dim: DMA only the 8-row tile holding
        # the offset, then take the size-1 dynamic sublane slice in-kernel.
        sub = 8 if dim % 8 == 0 else dim
        block_in = list(x1_shape)
        block_in[ax] = sub
        out_shape = list(x1_shape)
        out_shape[ax] = 1
        out_shape = tuple(out_shape)

        def idx_in(i, off):
            idx = [0] * ndim
            idx[ax] = off[0] // sub
            return tuple(idx)

        def kernel(off_ref, x_ref, o_ref):
            r = off_ref[0] % sub
            sl = [slice(None)] * ndim
            sl[ax] = pl.ds(r, 1)
            o_ref[...] = x_ref[tuple(sl)]

        in_spec = pl.BlockSpec(tuple(block_in), idx_in)
        out_spec = pl.BlockSpec(out_shape, lambda i, off: (0,) * ndim)
        pallas_out = jax.ShapeDtypeStruct(out_shape, dtype)

    else:
        # ---- sliced axis is the lane (last) dim: DMA only the 128-lane tile
        # containing the offset; select the lane via iota mask + lane reduce;
        # emit a lane-dense output (trailing size-1 dim restored in wrapper).
        lane_blk = 128 if dim % 128 == 0 else dim
        block_in = list(x1_shape)
        block_in[ax] = lane_blk

        out2d = tuple(x1_shape[:-1])            # lane-dense output
        reshape_to = tuple(x1_shape[:-1]) + (1,)

        def idx_in(i, off):
            idx = [0] * ndim
            idx[ax] = off[0] // lane_blk
            return tuple(idx)

        def kernel(off_ref, x_ref, o_ref):
            lane = off_ref[0] % lane_blk
            tile = x_ref[...]
            mask = jax.lax.broadcasted_iota(jnp.int32, tile.shape, ndim - 1) == lane
            # Exactly one lane is kept, so the reduce is exact for any dtype.
            sel = jnp.where(mask, tile, jnp.zeros_like(tile)).sum(axis=-1)
            o_ref[...] = sel.astype(o_ref.dtype)

        in_spec = pl.BlockSpec(tuple(block_in), idx_in)
        out_spec = pl.BlockSpec(out2d, lambda i, off: (0,) * (ndim - 1))
        pallas_out = jax.ShapeDtypeStruct(out2d, dtype)

    grid_spec = pltpu.PrefetchScalarGridSpec(
        num_scalar_prefetch=1,
        grid=(1,),
        in_specs=[in_spec],
        out_specs=out_spec,
    )

    call = pl.pallas_call(
        kernel,
        out_shape=pallas_out,
        grid_spec=grid_spec,
        compiler_params=pltpu.CompilerParams(
            dimension_semantics=("arbitrary",)),
    )

    clamp_max = dim - 1

    def fn(x1, offset_vec):
        # Clamp: Pallas/DMA has no runtime bounds check; an OOB block index
        # would silently read adjacent / stale memory.
        off = jnp.clip(offset_vec.astype(jnp.int32), 0, clamp_max)
        y = call(off, x1)
        if reshape_to is not None:
            y = y.reshape(reshape_to)
        return y

    return jax.jit(fn)


def gather_slice_model(axis, x1, x2):
    """JAX/Pallas equivalent of the PyTorch module's forward."""
    offset = x2[0, :]  # 1-element integer vector
    fn = _build_gather_slice(int(axis), tuple(x1.shape),
                             jnp.dtype(x1.dtype).name)
    return fn(x1, offset)


if __name__ == "__main__":
    key = jax.random.PRNGKey(0)
    k1, _ = jax.random.split(key)

    # Small shapes consistent with the forward: a 3-D x1 and a 2-D integer x2.
    D0, D1, D2 = 4, 8, 128
    x1 = jax.random.normal(k1, (D0, D1, D2), dtype=jnp.float32)
    # x2[0, :] must be a single-element integer usable as a slice offset.
    x2 = jnp.array([[3]], dtype=jnp.int32)  # offset = 3

    ok = True
    for axis in (0, 1, 2):
        y = jax.block_until_ready(gather_slice_model(axis, x1, x2))

        # Pure-JAX reference.
        off = int(x2[0, 0])
        if axis == 0:
            ref = x1[off:off + 1]
        elif axis == 1:
            ref = x1[:, off:off + 1]
        else:
            ref = x1[..., off:off + 1]

        if y.shape != ref.shape or not jnp.allclose(y, ref):
            ok = False

    if ok:
        print("KERNEL_OK")
</pallas_src>

<mosaic_0001>
module attributes {stable_mosaic.version = 11 : i64} {
  func.func @kernel(%arg0: i32, %arg1: memref<1xi32, #tpu.memory_space<smem>>, %arg2: memref<1x8x128xf32, #tpu.memory_space<vmem>>, %arg3: memref<1x8x128xf32, #tpu.memory_space<vmem>>) attributes {dimension_semantics = [#tpu.dimension_semantics<arbitrary>], iteration_bounds = array<i64: 1>, scalar_prefetch = 1 : i64, scratch_operands = 0 : i64, tpu.core_type = #tpu.core_type<tc>, window_params = [{transform_indices = @transform_0, window_bounds = array<i64: 1, 8, 128>}, {pipeline_mode = #tpu.pipeline_mode<synchronous>, transform_indices = @transform_1, window_bounds = array<i64: 1, 8, 128>}]} {
    %c0 = arith.constant 0 : index
    %c0_0 = arith.constant 0 : index
    %c0_1 = arith.constant 0 : index
    %0 = vector.load %arg2[%c0, %c0_0, %c0_1] : memref<1x8x128xf32, #tpu.memory_space<vmem>>, vector<1x8x128xf32>
    %c0_2 = arith.constant 0 : index
    %c0_3 = arith.constant 0 : index
    %c0_4 = arith.constant 0 : index
    %1 = vector.load %arg3[%c0_2, %c0_3, %c0_4] : memref<1x8x128xf32, #tpu.memory_space<vmem>>, vector<1x8x128xf32>
    tpu.vector_store %arg3[%c0_2, %c0_3, %c0_4], %0 {strides = array<i32>} : memref<1x8x128xf32, #tpu.memory_space<vmem>>, vector<1x8x128xf32>,
    return
  }
  func.func @transform_0(%arg0: i32, %arg1: memref<1xi32, #tpu.memory_space<smem>>) -> (i32, i32, i32) {
    %c0 = arith.constant 0 : index
    %0 = memref.load %arg1[%c0] : memref<1xi32, #tpu.memory_space<smem>>
    %c0_i32 = arith.constant 0 : i32
    %c0_i32_0 = arith.constant 0 : i32
    %c0_i32_1 = arith.constant 0 : i32
    return %0, %c0_i32, %c0_i32_0 : i32, i32, i32
  }
  func.func @transform_1(%arg0: i32, %arg1: memref<1xi32, #tpu.memory_space<smem>>) -> (i32, i32, i32) {
    %c0_i32 = arith.constant 0 : i32
    %c0_i32_0 = arith.constant 0 : i32
    %c0_i32_1 = arith.constant 0 : i32
    %c0_i32_2 = arith.constant 0 : i32
    return %c0_i32, %c0_i32_0, %c0_i32_1 : i32, i32, i32
  }
}

</mosaic_0001>

<bundles_post_ra>
// kernel: fn.1
= control target key start
LH: loop header
LB: loop body
LE: loop exit
PB: predicated region body
PF: predicated region fallthrough
CT: control target
= control target key end

     0   :  { %8 = vsyncpa [#allocation5], 0  ;;  %s137_s0 = inlined_call_operand.<no memory space> [shape: s32[1], index: 0, kind: input, shape index: {}]   ;;  %s138_s1 = inlined_call_operand.hbm [shape: f32[4,8,128], index: 1, kind: input, shape index: {}]   ;;  %s139_s2 = inlined_call_operand.hbm [shape: f32[1,8,128], index: 2, kind: output, shape index: {}]  }
   0x1   :  { %9 = vsyncpa [#allocation6], 0  ;;  %s50_s11 = sshll.u32 %s137_s0, 3  ;;  %s105_s15 = smov [#allocation4]  }
   0x2   :  { %s16_s14 = scalar_lea.hbm %s138_s1, %s50_s11  ;;  %s20_s16 = sshll.u32 %s105_s15, 4  ;;  %s21_s16 = int_to_ptr.vmem [resolvable:$true] %s20_s16 }
   0x3   :  { %s18_s17 = sshll.u32 %s16_s14, 4  ;;  %s57_s22 = scalar_lea.hbm %s138_s1, 32  ;;  %s19_s17 = int_to_ptr.hbm [resolvable:$true] %s18_s17 }
   0x4   :  { %s53_s18 = sshra.s32 %s19_s17, 4  ;;  %s54_s18 = int_to_ptr.hbm [resolvable:$true] %s53_s18 }
   0x5   :  { %s55_s19 = scalar_lea.hbm %s54_s18, 8  ;;  %p58_p1 = scmp.lt.s32.totalorder %s54_s18, %s138_s1 }
   0x6   :  { %p56_p0 = scmp.ne.s32.totalorder %s54_s18, %s55_s19  ;;  %p59_p2 = scmp.lt.s32.totalorder %s57_s22, %s55_s19 }
   0x8   :  { %p60_p3 = por %p59_p2, %p58_p1 }
   0xa   :  { %p61_p4 = pnand %p60_p3, %p56_p0 }
   0xc   :  { %64 = shalt.err (!%p61_p4)
}
   0xd   :  { %23 = dma.hbm_to_vmem [thread:$0]  %s19_s17, 128, %s21_s16, [#allocation5]  }
   0xe   :  { %101 = dma.done.wait [#allocation5], 128  }
   0xf   :  { %102 = vsyncadd [#allocation5], 4294967168  ;;  %s106_s0 = smov [#allocation7]   ;;  %s38_s28 = sshll.u32 %s139_s2, 4  ;;  %v29_v0 = vld [vmem:[#allocation4] sm:$0xff]  ;;  %s39_s28 = int_to_ptr.hbm [resolvable:$true] %s38_s28 }
  0x10   :  { %s36_s25 = sshll.u32 %s106_s0, 4  ;;  %30 = vst [vmem:[#allocation7] sm:$0xff] %v29_v0  ;;  %s37_s25 = int_to_ptr.vmem [resolvable:$true] %s36_s25 }
  0x11   :  { %41 = dma.vmem_to_hbm [thread:$0]  %s37_s25, 128, %s39_s28, [#allocation6]  }
  0x12   :  { %103 = dma.done.wait [#allocation6], 128  }
  0x13   :  { %104 = vsyncadd [#allocation6], 4294967168 }
  0x14   :  { %46 = vsyncpa [#allocation5], 1 }
  0x15   :  { %47 = vsyncpa [#allocation6], 1 }

</bundles_post_ra>
